<compile_context>
chip_gen: v5e
topology: v5e:2x2
jax: 0.10.0
libtpu: 0.0.40
codegen_flags: <defaults>
</compile_context>

<pallas_src>
import math
import functools

import jax
import jax.numpy as jnp
from jax.experimental import pallas as pl
from jax.experimental.pallas import tpu as pltpu


def _softplus(z):
    # Matches torch.nn.functional.softplus (threshold=20).
    return jnp.where(z > 20.0, z, jnp.log1p(jnp.exp(jnp.minimum(z, 20.0))))


# ---------------------------------------------------------------------------
# Pass 1: fused projection (MXU-bound).
# ---------------------------------------------------------------------------
def _proj_kernel(x_ref, wx_ref, bx_ref, wdt_ref, bdt_ref,
                 dt_ref, bm_ref, cm_ref, *, d_rank, d_hidden):
    R, N = d_rank, d_hidden
    xb = x_ref[0]                                      # (Lc, D) f32
    xm = xb.astype(wx_ref.dtype)                       # bf16 cast for the MXU

    # Single matmul for dt_low / B / C; slice the small (Lc, R+2N) result.
    proj = jnp.dot(xm, wx_ref[...],
                   preferred_element_type=jnp.float32) + bx_ref[...]
    dt_low = proj[:, :R]                               # (Lc, R)
    bm_ref[0] = proj[:, R:R + N]                       # (Lc, N)
    cm_ref[0] = proj[:, R + N:]                        # (Lc, N)

    # dt_proj + softplus (kept in f32 apart from the bf16 MXU push).
    dt_pre = jnp.dot(dt_low.astype(wdt_ref.dtype), wdt_ref[...],
                     preferred_element_type=jnp.float32) + bdt_ref[...]
    dt_ref[0] = _softplus(dt_pre)                      # (Lc, D)


# ---------------------------------------------------------------------------
# Pass 2: chunked sequential selective scan (VPU/EUP-bound).
# ---------------------------------------------------------------------------
def _scan_kernel(dt_ref, x_ref, b_ref, c_ref, a_ref, y_ref,
                 h_ref, da_ref, dbx_ref):
    # dt_ref, x_ref  : (1, Lc, Td)   per-chunk dt and raw x (dt*x fused here)
    # b_ref, c_ref   : (1, Lc, N)    B / C projections
    # a_ref          : (N, Td)       -exp(A_log), lane-dense D-tile
    # y_ref          : (1, Lc, Td)
    # h_ref          : (N, Td)       recurrent state, carried across chunks
    # da_ref, dbx_ref: (Lc, N, Td)   chunk-local scratch
    lc = dt_ref.shape[1]

    # Correctness of the h carry requires the L-chunk axis to be the LAST
    # grid axis and marked "arbitrary" (wrapper guarantees this).
    @pl.when(pl.program_id(2) == 0)
    def _init():
        h_ref[...] = jnp.zeros_like(h_ref)

    dt_c = dt_ref[0]                   # (Lc, Td)
    dtx_c = dt_c * x_ref[0]            # (Lc, Td)  fused dt*x (no HBM temp)
    a_nd = a_ref[...]                  # (N, Td)

    # Bulk, lane-dense element-wise phase (exp fed to the EUP with full vregs).
    da_ref[...] = jnp.exp(dt_c[:, None, :] * a_nd[None, :, :]).astype(da_ref.dtype)
    dbx_ref[...] = dtx_c[:, None, :] * b_ref[0][:, :, None]        # (Lc, N, Td)

    # Exact sequential recurrence; h is carried in VREGS (fori_loop carry),
    # h_ref is touched only once before and once after the loop.
    def body(t, h):
        h_new = da_ref[t].astype(jnp.float32) * h + dbx_ref[t]
        dbx_ref[t] = h_new             # reuse scratch to hold scanned states
        return h_new

    h_final = jax.lax.fori_loop(0, lc, body, h_ref[...],
                                unroll=min(int(lc), 8))
    h_ref[...] = h_final

    # y[t, d] = sum_n H[t, n, d] * C[t, n]  -> bulk sublane reduce over N.
    y_ref[0] = jnp.sum(dbx_ref[...] * c_ref[0][:, :, None],
                       axis=1).astype(y_ref.dtype)


# ---------------------------------------------------------------------------
# Wrapper
# ---------------------------------------------------------------------------
def ssm_forward(x, wx, bx, wdt, bdt, A_log, *, l_chunk=None, l_chunk_proj=None,
                tile_d=None, matmul_dtype=jnp.bfloat16, da_dtype=jnp.float32):
    """Forward pass matching SSM.forward(x, cache=False, one_step=False).

    x:     (B, L, D) f32
    wx:    (R + 2N, D)  x_proj.weight (PyTorch (out, in) layout)
    bx:    (R + 2N,)    x_proj.bias
    wdt:   (D, R)       dt_proj.weight
    bdt:   (D,)         dt_proj.bias
    A_log: (D, N)

    Note: the kernel computes the exact recurrence; the PyTorch Hillis-Steele
    loop equals it only when L is a power of two.
    """
    Bsz, L, D = x.shape
    R = wdt.shape[1]
    N = A_log.shape[1]
    f32 = jnp.float32

    # ---- tiling --------------------------------------------------------------
    if l_chunk is None:
        l_chunk = L if L <= 128 else 128
    if l_chunk_proj is None:
        l_chunk_proj = l_chunk
    if tile_d is None:
        tile_d = D if D <= 512 else 512
        # v7x has 2 TensorCores: with Bsz == 1 make sure the parallel grid
        # axes (Bsz * n_dt) still have >= 2 iterations.
        if Bsz == 1 and tile_d == D and D >= 256 and (D // 2) % 128 == 0:
            tile_d = D // 2
    assert L % l_chunk == 0 and (l_chunk == L or l_chunk % 8 == 0)
    assert L % l_chunk_proj == 0 and (l_chunk_proj == L or l_chunk_proj % 8 == 0)
    assert D % tile_d == 0 and (tile_d == D or tile_d % 128 == 0)
    n_lc = L // l_chunk
    n_lc_p = L // l_chunk_proj
    n_dt = D // tile_d

    # ---- parameter prep (hoisted out of the hot path) -------------------------
    w_x = wx.T.astype(matmul_dtype)                  # (D, R+2N)  bf16, resident
    b_x = bx.reshape(1, R + 2 * N).astype(f32)
    wdt_t = wdt.T.astype(matmul_dtype)               # (R, D)
    bdt_r = bdt.reshape(1, D).astype(f32)
    a_neg_t = (-jnp.exp(A_log)).T.astype(f32)        # (N, D) lane-dense
    x32 = x.astype(f32)

    # ---- pass 1: fused projection ---------------------------------------------
    dt, bm, cm = pl.pallas_call(
        functools.partial(_proj_kernel, d_rank=R, d_hidden=N),
        out_shape=(
            jax.ShapeDtypeStruct((Bsz, L, D), f32),   # dt (post softplus)
            jax.ShapeDtypeStruct((Bsz, L, N), f32),   # B
            jax.ShapeDtypeStruct((Bsz, L, N), f32),   # C
        ),
        grid_spec=pltpu.PrefetchScalarGridSpec(
            num_scalar_prefetch=0,
            grid=(Bsz, n_lc_p),
            in_specs=[
                pl.BlockSpec((1, l_chunk_proj, D), lambda b, l: (b, l, 0)),   # x
                pl.BlockSpec((D, R + 2 * N), lambda b, l: (0, 0)),            # w_x
                pl.BlockSpec((1, R + 2 * N), lambda b, l: (0, 0)),            # b_x
                pl.BlockSpec((R, D), lambda b, l: (0, 0)),                    # w_dt
                pl.BlockSpec((1, D), lambda b, l: (0, 0)),                    # b_dt
            ],
            out_specs=(
                pl.BlockSpec((1, l_chunk_proj, D), lambda b, l: (b, l, 0)),
                pl.BlockSpec((1, l_chunk_proj, N), lambda b, l: (b, l, 0)),
                pl.BlockSpec((1, l_chunk_proj, N), lambda b, l: (b, l, 0)),
            ),
        ),
        compiler_params=pltpu.CompilerParams(
            dimension_semantics=("parallel", "parallel")),
    )(x32, w_x, b_x, wdt_t, bdt_r)

    # ---- pass 2: chunked sequential selective scan -----------------------------
    da_bytes = jnp.dtype(da_dtype).itemsize
    scratch_bytes = (l_chunk * N * tile_d) * (4 + da_bytes) + N * tile_d * 4
    vmem_limit = None
    if scratch_bytes > 24 * 1024 * 1024:
        vmem_limit = min(100 * 1024 * 1024, scratch_bytes + 16 * 1024 * 1024)

    # The L-chunk grid axis MUST stay last and "arbitrary": the carried state
    # h_ref is re-initialized at program_id(2) == 0.
    y = pl.pallas_call(
        _scan_kernel,
        out_shape=jax.ShapeDtypeStruct((Bsz, L, D), f32),
        grid_spec=pltpu.PrefetchScalarGridSpec(
            num_scalar_prefetch=0,
            grid=(Bsz, n_dt, n_lc),
            in_specs=[
                pl.BlockSpec((1, l_chunk, tile_d), lambda b, d, l: (b, l, d)),  # dt
                pl.BlockSpec((1, l_chunk, tile_d), lambda b, d, l: (b, l, d)),  # x
                pl.BlockSpec((1, l_chunk, N), lambda b, d, l: (b, l, 0)),       # B
                pl.BlockSpec((1, l_chunk, N), lambda b, d, l: (b, l, 0)),       # C
                pl.BlockSpec((N, tile_d), lambda b, d, l: (0, d)),              # -exp(A_log)^T
            ],
            out_specs=pl.BlockSpec((1, l_chunk, tile_d),
                                   lambda b, d, l: (b, l, d)),
            scratch_shapes=[
                pltpu.VMEM((N, tile_d), f32),               # carried state h
                pltpu.VMEM((l_chunk, N, tile_d), da_dtype),  # dA (chunk)
                pltpu.VMEM((l_chunk, N, tile_d), f32),       # dBX -> scanned states
            ],
        ),
        compiler_params=pltpu.CompilerParams(
            dimension_semantics=("parallel", "parallel", "arbitrary"),
            vmem_limit_bytes=vmem_limit),
    )(dt, x32, bm, cm, a_neg_t)
    return y


# ---------------------------------------------------------------------------
# Pure-JAX transcription of the PyTorch forward (cache=False path), used only
# for the correctness check (mirrors the module's Hillis-Steele loop).
# ---------------------------------------------------------------------------
def ssm_reference(x, wx, bx, wdt, bdt, A_log):
    L = x.shape[1]
    R = wdt.shape[1]
    N = A_log.shape[1]
    proj = x @ wx.T + bx
    dt_low, Bm, Cm = proj[..., :R], proj[..., R:R + N], proj[..., R + N:]
    A = -jnp.exp(A_log)
    dt = _softplus(dt_low @ wdt.T + bdt)
    dA = jnp.exp(jnp.einsum('bld,dn->bldn', dt, A))
    dBX = jnp.einsum('bld,bln->bldn', dt, Bm) * x[..., None]
    for i in range(int(math.log2(L))):
        s = 2 ** i
        dBX = dBX.at[:, s:].set(dA[:, s:] * dBX[:, :-s] + dBX[:, s:])
        dA = dA.at[:, s:].set(dA[:, s:] * dA[:, :-s])
    return jnp.einsum('bldn,bln->bld', dBX, Cm)


if __name__ == "__main__":
    # Small, module-consistent shapes (L is a power of two so the PyTorch
    # Hillis-Steele reference equals the exact recurrence).
    Bsz, L = 2, 8
    d_expanded, d_rank, d_hidden = 32, 4, 16
    dt_min, dt_max = 0.001, 0.1

    key = jax.random.PRNGKey(0)
    k_wx, k_bx, k_wdt, k_dt, k_x = jax.random.split(key, 5)

    # Deterministic parameter init mirroring the module's __init__.
    bound_x = 1.0 / math.sqrt(d_expanded)
    wx = jax.random.uniform(k_wx, (d_rank + 2 * d_hidden, d_expanded),
                            minval=-bound_x, maxval=bound_x, dtype=jnp.float32)
    bx = jax.random.uniform(k_bx, (d_rank + 2 * d_hidden,),
                            minval=-bound_x, maxval=bound_x, dtype=jnp.float32)
    dt_init_std = 1.0 / math.sqrt(d_rank)
    wdt = jax.random.uniform(k_wdt, (d_expanded, d_rank),
                             minval=-dt_init_std, maxval=dt_init_std,
                             dtype=jnp.float32)
    dt0 = jnp.exp(jax.random.uniform(k_dt, (d_expanded,), dtype=jnp.float32)
                  * (math.log(dt_max) - math.log(dt_min)) + math.log(dt_min))
    dt0 = jnp.maximum(dt0, dt_min)
    bdt = dt0 + jnp.log(-jnp.expm1(-dt0))                 # inv_dt (dt_proj bias)
    A_log = jnp.log(jnp.tile(
        jnp.arange(1, d_hidden + 1, dtype=jnp.float32)[None, :],
        (d_expanded, 1)))                                 # (D, N)

    x = jax.random.normal(k_x, (Bsz, L, d_expanded), dtype=jnp.float32)

    y_ref = ssm_reference(x, wx, bx, wdt, bdt, A_log)

    # Exactness check with f32 matmuls.
    y_f32 = jax.block_until_ready(
        ssm_forward(x, wx, bx, wdt, bdt, A_log, matmul_dtype=jnp.float32))
    assert y_f32.shape == (Bsz, L, d_expanded)
    assert jnp.allclose(y_f32, y_ref, rtol=1e-4, atol=1e-4), \
        "f32 kernel mismatch vs. reference"

    # Default (bf16 MXU) path: mixed-precision tolerance relative to scale.
    y_bf = jax.block_until_ready(ssm_forward(x, wx, bx, wdt, bdt, A_log))
    assert y_bf.shape == (Bsz, L, d_expanded)
    err = float(jnp.max(jnp.abs(y_bf - y_ref)))
    scale = float(jnp.max(jnp.abs(y_ref)))
    assert err <= 0.05 * scale + 1e-3, \
        f"bf16 kernel mismatch vs. reference (err={err}, scale={scale})"

    print("KERNEL_OK")
</pallas_src>

<mosaic_0001>
module attributes {stable_mosaic.version = 11 : i64} {
  func.func @_proj_kernel(%arg0: i32, %arg1: i32, %arg2: memref<1x8x32xf32, #tpu.memory_space<vmem>>, %arg3: memref<32x36xf32, #tpu.memory_space<vmem>>, %arg4: memref<1x36xf32, #tpu.memory_space<vmem>>, %arg5: memref<4x32xf32, #tpu.memory_space<vmem>>, %arg6: memref<1x32xf32, #tpu.memory_space<vmem>>, %arg7: memref<1x8x32xf32, #tpu.memory_space<vmem>>, %arg8: memref<1x8x16xf32, #tpu.memory_space<vmem>>, %arg9: memref<1x8x16xf32, #tpu.memory_space<vmem>>) attributes {dimension_semantics = [#tpu.dimension_semantics<parallel>, #tpu.dimension_semantics<parallel>], iteration_bounds = array<i64: 2, 1>, scalar_prefetch = 0 : i64, scratch_operands = 0 : i64, tpu.core_type = #tpu.core_type<tc>, window_params = [{transform_indices = @transform_0, window_bounds = array<i64: 1, 8, 32>}, {pipeline_mode = #tpu.pipeline_mode<synchronous>, transform_indices = @transform_1, window_bounds = array<i64: 32, 36>}, {pipeline_mode = #tpu.pipeline_mode<synchronous>, transform_indices = @transform_2, window_bounds = array<i64: 1, 36>}, {pipeline_mode = #tpu.pipeline_mode<synchronous>, transform_indices = @transform_3, window_bounds = array<i64: 4, 32>}, {pipeline_mode = #tpu.pipeline_mode<synchronous>, transform_indices = @transform_4, window_bounds = array<i64: 1, 32>}, {transform_indices = @transform_5, window_bounds = array<i64: 1, 8, 32>}, {transform_indices = @transform_6, window_bounds = array<i64: 1, 8, 16>}, {transform_indices = @transform_7, window_bounds = array<i64: 1, 8, 16>}]} {
    %c0 = arith.constant 0 : index
    %c0_0 = arith.constant 0 : index
    %c0_1 = arith.constant 0 : index
    %0 = vector.load %arg2[%c0, %c0_0, %c0_1] : memref<1x8x32xf32, #tpu.memory_space<vmem>>, vector<1x8x32xf32>
    %1 = vector.shape_cast %0 : vector<1x8x32xf32> to vector<8x32xf32>
    %c0_2 = arith.constant 0 : index
    %c0_3 = arith.constant 0 : index
    %2 = vector.load %arg3[%c0_2, %c0_3] : memref<32x36xf32, #tpu.memory_space<vmem>>, vector<32x36xf32>
    %cst = arith.constant dense<0.000000e+00> : vector<8x36xf32>
    %3 = tpu.matmul %1, %2, %cst {dimension_numbers = #tpu.dot_dimension_numbers<[1], [0], [0], [1], [0, 0, 1, 1], [], []>} : vector<8x32xf32>, vector<32x36xf32>, vector<8x36xf32> -> vector<8x36xf32>
    %c0_4 = arith.constant 0 : index
    %c0_5 = arith.constant 0 : index
    %4 = vector.load %arg4[%c0_4, %c0_5] : memref<1x36xf32, #tpu.memory_space<vmem>>, vector<1x36xf32>
    %5 = vector.broadcast %4 : vector<1x36xf32> to vector<8x36xf32>
    %6 = arith.addf %3, %5 : vector<8x36xf32>
    %7 = vector.extract_strided_slice %6 {offsets = [0, 0], sizes = [8, 4], strides = [1, 1]} : vector<8x36xf32> to vector<8x4xf32>
    %8 = vector.extract_strided_slice %6 {offsets = [0, 4], sizes = [8, 16], strides = [1, 1]} : vector<8x36xf32> to vector<8x16xf32>
    %c0_6 = arith.constant 0 : index
    %c0_7 = arith.constant 0 : index
    %c0_8 = arith.constant 0 : index
    %9 = vector.load %arg8[%c0_6, %c0_7, %c0_8] : memref<1x8x16xf32, #tpu.memory_space<vmem>>, vector<1x8x16xf32>
    %10 = vector.shape_cast %9 : vector<1x8x16xf32> to vector<8x16xf32>
    %11 = vector.shape_cast %8 : vector<8x16xf32> to vector<1x8x16xf32>
    tpu.vector_store %arg8[%c0_6, %c0_7, %c0_8], %11 {strides = array<i32>} : memref<1x8x16xf32, #tpu.memory_space<vmem>>, vector<1x8x16xf32>,
    %12 = vector.extract_strided_slice %6 {offsets = [0, 20], sizes = [8, 16], strides = [1, 1]} : vector<8x36xf32> to vector<8x16xf32>
    %c0_9 = arith.constant 0 : index
    %c0_10 = arith.constant 0 : index
    %c0_11 = arith.constant 0 : index
    %13 = vector.load %arg9[%c0_9, %c0_10, %c0_11] : memref<1x8x16xf32, #tpu.memory_space<vmem>>, vector<1x8x16xf32>
    %14 = vector.shape_cast %13 : vector<1x8x16xf32> to vector<8x16xf32>
    %15 = vector.shape_cast %12 : vector<8x16xf32> to vector<1x8x16xf32>
    tpu.vector_store %arg9[%c0_9, %c0_10, %c0_11], %15 {strides = array<i32>} : memref<1x8x16xf32, #tpu.memory_space<vmem>>, vector<1x8x16xf32>,
    %c0_12 = arith.constant 0 : index
    %c0_13 = arith.constant 0 : index
    %16 = vector.load %arg5[%c0_12, %c0_13] : memref<4x32xf32, #tpu.memory_space<vmem>>, vector<4x32xf32>
    %cst_14 = arith.constant dense<0.000000e+00> : vector<8x32xf32>
    %17 = tpu.matmul %7, %16, %cst_14 {dimension_numbers = #tpu.dot_dimension_numbers<[1], [0], [0], [1], [0, 0, 1, 1], [], []>} : vector<8x4xf32>, vector<4x32xf32>, vector<8x32xf32> -> vector<8x32xf32>
    %c0_15 = arith.constant 0 : index
    %c0_16 = arith.constant 0 : index
    %18 = vector.load %arg6[%c0_15, %c0_16] : memref<1x32xf32, #tpu.memory_space<vmem>>, vector<1x32xf32>
    %19 = vector.broadcast %18 : vector<1x32xf32> to vector<8x32xf32>
    %20 = arith.addf %17, %19 : vector<8x32xf32>
    %cst_17 = arith.constant 2.000000e+01 : f32
    %21 = vector.broadcast %cst_17 : f32 to vector<8x32xf32>
    %22 = arith.cmpf ogt, %20, %21 : vector<8x32xf32>
    %cst_18 = arith.constant 2.000000e+01 : f32
    %23 = vector.broadcast %cst_18 : f32 to vector<8x32xf32>
    %24 = arith.minimumf %20, %23 : vector<8x32xf32>
    %25 = math.exp %24 : vector<8x32xf32>
    %26 = math.log1p %25 : vector<8x32xf32>
    %27 = arith.select %22, %20, %26 : vector<8x32xi1>, vector<8x32xf32>
    %c0_19 = arith.constant 0 : index
    %c0_20 = arith.constant 0 : index
    %c0_21 = arith.constant 0 : index
    %28 = vector.load %arg7[%c0_19, %c0_20, %c0_21] : memref<1x8x32xf32, #tpu.memory_space<vmem>>, vector<1x8x32xf32>
    %29 = vector.shape_cast %28 : vector<1x8x32xf32> to vector<8x32xf32>
    %30 = vector.shape_cast %27 : vector<8x32xf32> to vector<1x8x32xf32>
    tpu.vector_store %arg7[%c0_19, %c0_20, %c0_21], %30 {strides = array<i32>} : memref<1x8x32xf32, #tpu.memory_space<vmem>>, vector<1x8x32xf32>,
    return
  }
  func.func @transform_0(%arg0: i32, %arg1: i32) -> (i32, i32, i32) {
    %c0_i32 = arith.constant 0 : i32
    %c0_i32_0 = arith.constant 0 : i32
    return %arg0, %arg1, %c0_i32 : i32, i32, i32
  }
  func.func @transform_1(%arg0: i32, %arg1: i32) -> (i32, i32) {
    %c0_i32 = arith.constant 0 : i32
    %c0_i32_0 = arith.constant 0 : i32
    %c0_i32_1 = arith.constant 0 : i32
    return %c0_i32, %c0_i32_0 : i32, i32
  }
  func.func @transform_2(%arg0: i32, %arg1: i32) -> (i32, i32) {
    %c0_i32 = arith.constant 0 : i32
    %c0_i32_0 = arith.constant 0 : i32
    %c0_i32_1 = arith.constant 0 : i32
    return %c0_i32, %c0_i32_0 : i32, i32
  }
  func.func @transform_3(%arg0: i32, %arg1: i32) -> (i32, i32) {
    %c0_i32 = arith.constant 0 : i32
    %c0_i32_0 = arith.constant 0 : i32
    %c0_i32_1 = arith.constant 0 : i32
    return %c0_i32, %c0_i32_0 : i32, i32
  }
  func.func @transform_4(%arg0: i32, %arg1: i32) -> (i32, i32) {
    %c0_i32 = arith.constant 0 : i32
    %c0_i32_0 = arith.constant 0 : i32
    %c0_i32_1 = arith.constant 0 : i32
    return %c0_i32, %c0_i32_0 : i32, i32
  }
  func.func @transform_5(%arg0: i32, %arg1: i32) -> (i32, i32, i32) {
    %c0_i32 = arith.constant 0 : i32
    %c0_i32_0 = arith.constant 0 : i32
    return %arg0, %arg1, %c0_i32 : i32, i32, i32
  }
  func.func @transform_6(%arg0: i32, %arg1: i32) -> (i32, i32, i32) {
    %c0_i32 = arith.constant 0 : i32
    %c0_i32_0 = arith.constant 0 : i32
    return %arg0, %arg1, %c0_i32 : i32, i32, i32
  }
  func.func @transform_7(%arg0: i32, %arg1: i32) -> (i32, i32, i32) {
    %c0_i32 = arith.constant 0 : i32
    %c0_i32_0 = arith.constant 0 : i32
    return %arg0, %arg1, %c0_i32 : i32, i32, i32
  }
}

</mosaic_0001>

<bundles_post_ra>
// kernel: tpu_custom_call.1
= control target key start
LH: loop header
LB: loop body
LE: loop exit
PB: predicated region body
PF: predicated region fallthrough
CT: control target
= control target key end

     0   :  { %s1286_s0 = inlined_call_operand.hbm [shape: f32[2,8,32], index: 0, kind: input, shape index: {}]   ;;  %s1287_s1 = inlined_call_operand.hbm [shape: f32[32,36], index: 1, kind: input, shape index: {}]   ;;  %s1288_s2 = inlined_call_operand.vmem [shape: f32[1,36], index: 2, kind: input, shape index: {}]   ;;  %s1289_s3 = inlined_call_operand.hbm [shape: f32[4,32], index: 3, kind: input, shape index: {}]   ;;  %s1290_s4 = inlined_call_operand.vmem [shape: f32[1,32], index: 4, kind: input, shape index: {}]   ;;  %s1291_s5 = inlined_call_operand.hbm [shape: f32[2,8,32], index: 5, kind: output, shape index: {0}]   ;;  %s1292_s6 = inlined_call_operand.hbm [shape: f32[2,8,16], index: 6, kind: output, shape index: {1}]   ;;  %s1293_s7 = inlined_call_operand.hbm [shape: f32[2,8,16], index: 7, kind: output, shape index: {2}]  }
   0x1   :  { %1295 = sst [smem:[#allocation16_spill]] %s1286_s0 }
   0x2   :  { %1296 = sst [smem:[#allocation17_spill]] %s1287_s1 }
   0x3   :  { %1297 = sst [smem:[#allocation18_spill]] %s1288_s2 }
   0x4   :  { %1298 = sst [smem:[#allocation19_spill]] %s1289_s3 }
   0x5   :  { %13 = vsyncpa [#allocation3], 0 }
   0x6   :  { %15 = vsyncpa [#allocation3 + $0x1], 0 }
   0x7   :  { %16 = vsyncpa [#allocation6], 0 }
   0x8   :  { %17 = vsyncpa [#allocation4], 0 }
   0x9   :  { %19 = vsyncpa [#allocation4 + $0x1], 0 }
   0xa   :  { %20 = vsyncpa [#allocation10], 0 }
   0xb   :  { %22 = vsyncpa [#allocation10 + $0x1], 0  ;;  %s1090_s24 = smov 0   ;;  %s1092_s25 = smov 0  }
   0xc   :  { %s1094_s26 = smov 0   ;;  %s1096_s27 = smov 0  }
   0xd   :  { %s1098_s28 = smov 0   ;;  %s1100_s29 = smov 0  }
   0xe LB: > { %s1121_s30 = sadd.s32 4294967295, %s1042_s29   ;;  %p679_p0 = scmp.ge.s32.totalorder %s1042_s29, 1  ;;  %s1042_s29 = sphi %s1100_s29, %s28_s29   ;;  %s1038_s28 = sphi %s1098_s28, %s1312_s28   ;;  %s1034_s27 = sphi %s1096_s27, %s1311_s27   ;;  %s1030_s26 = sphi %s1094_s26, %s1310_s26   ;;  %s1026_s25 = sphi %s1092_s25, %s1309_s25   ;;  %s1022_s24 = sphi %s1090_s24, %s1308_s24  }
   0xf   : > { %p63_p1 = scmp.eq.s32.totalorder %s1121_s30, 0  ;;  %p241_p2 = scmp.lt.s32.totalorder %s1042_s29, 3 }
  0x10   : > { %s1299_s1 = sld [smem:[#allocation17_spill]]  ;;  %s1044_s12 = smov [#allocation5]  }
  0x11   : > { %p1129_p3 = pnand %p679_p0, %p241_p2  ;;  %s254_s13 = sshll.u32 %s1044_s12, 4  ;;  %s255_s13 = int_to_ptr.vmem [resolvable:$true] %s254_s13 }
  0x12   : > { %p682_p6 = scmp.ge.s32.totalorder %s1042_s29, 2  ;;  %s1301_s3 = sld [smem:[#allocation19_spill]] }
  0x13   : > { %p719_p4 = pneg %p1129_p3  ;;  %s1045_s17 = smov 128  }
  0x14   : > { %s1046_s18 = smov 8   ;;  %s1047_s19 = smov [#allocation7]  }
  0x15   : > { %p720_p5 = pnand %p719_p4, %p63_p1  ;;  %s272_s20 = sshll.u32 %s1047_s19, 4  ;;  %s273_s20 = int_to_ptr.vmem [resolvable:$true] %s272_s20 }
  0x16   : > { %s252_s10 = sshll.u32 %s1299_s1, 4  ;;  %s40_s21 = sadd.s32 1, %s1038_s28  ;;  %s253_s10 = int_to_ptr.hbm [resolvable:$true] %s252_s10 }
  0x17   : > { %722 = dma.hbm_to_vmem [thread:$0]  (!%p720_p5), %s253_s10, 512, %s255_s13, [#allocation6], %s1045_s17, %s1045_s17, %s1046_s18  }
  0x18   : > { %s270_s16 = sshll.u32 %s1301_s3, 4  ;;  %s1294_s22 = sadd.s32 4294967294, %s1042_s29   ;;  %s271_s16 = int_to_ptr.hbm [resolvable:$true] %s270_s16 }
  0x19   : > { %725 = dma.hbm_to_vmem [thread:$0]  (!%p720_p5), %s271_s16, 64, %s273_s20, [#allocation6]  }
  0x1a   : > { %p42_p7 = scmp.ge.s32.totalorder %s40_s21, 2  ;;  %s49_s23 = sadd.s32 1, %s1030_s26 }
  0x1b   : > { %p56_p8 = scmp.ne.s32.totalorder %s1030_s26, %s1026_s25  ;;  %p57_p9 = scmp.eq.s32.totalorder %s1042_s29, 0 }
  0x1c   : > { %s1314_s21 = smov (%p42_p7, %s40_s21), 0  ;;  %p62_p10 = scmp.ne.s32.totalorder %s1026_s25, %s1022_s24 }
  0x1d   : > { %s44_s8 = ssub.s32 %s1038_s28, %s1314_s21  ;;  %p172_p11 = scmp.eq.s32.totalorder %s1121_s30, 1 }
  0x1e   : > { %p47_p12 = scmp.eq.s32.totalorder %s44_s8, 0  ;;  %p1156_p13 = por %p63_p1, %p62_p10 }
  0x1f   : > { %p1160_p0 = por %p172_p11, %p56_p8  ;;  %p178_p2 = scmp.eq.s32.totalorder %s1294_s22, 1 }
  0x20   : > { %s1167_s12 = scalar_select %p47_p12, %s1030_s26, %s49_s23  }
  0x21   : > { %p58_p4 = por %p57_p9, %p56_p8  ;;  %p1169_p5 = por %p178_p2, %p62_p10 }
  0x22   : > { %s286_s14 = sand.u32 1, %s1030_s26   ;;  %s684_s15 = sshll.u32 %s1038_s28, 3 }
  0x23   : > { %p742_p7 = scmp.lt.s32.totalorder %s1042_s29, 2  ;;  %s683_s16 = sshll.u32 %s286_s14, 3 }
  0x24   : > { %s1305_s0 = sld [smem:[#allocation16_spill]]  ;;  %s290_s8 = scalar_lea.vmem [#allocation2], %s683_s16 }
  0x25   : > { %s299_s1 = sshll.u32 %s290_s8, 4  ;;  %p727_p11 = pnand %p742_p7, %p58_p4  ;;  %s300_s1 = int_to_ptr.vmem [resolvable:$true] %s299_s1 }
  0x26   : > { %s287_s23 = scalar_lea.sflag [#allocation3], %s286_s14  ;;  %s1182_s22 = sand.u32 (!%p1129_p3), 1, %s1026_s25  }
  0x27   : > { %s1185_s3 = sshll.u32 (!%p1129_p3), %s1182_s22, 3 }
  0x28   : > { %308 = sbr.rel (%p1129_p3) target bundleno = 344 (0x158), region = 40  ;;  %s314_s16 = scalar_lea.vmem (!%p1129_p3), [#allocation2], %s1185_s3 }
  0x2a   : > { %s295_s19 = scalar_lea.hbm %s1305_s0, %s684_s15  ;;  %s311_s15 = scalar_lea.sflag (!%p1129_p3), [#allocation3], %s1182_s22 }
  0x2b   : > { %s297_s20 = sshll.u32 %s295_s19, 4  ;;  %s298_s20 = int_to_ptr.hbm [resolvable:$true] %s297_s20 }
  0x2c   : > { %729 = dma.hbm_to_vmem [thread:$0]  (!%p727_p11), %s298_s20, 128, %s300_s1, %s287_s23  }
  0x2d   : > { %1005 = dma.done.wait (%p1156_p13), %s311_s15, 128  }
  0x2e   : > { %1007 = vsyncadd (%p1156_p13), %s311_s15, 4294967168 }
  0x2f   : > { %1009 = dma.done.wait (%p63_p1), [#allocation6], 576  }
  0x30   : > { %1011 = vsyncadd (%p63_p1), [#allocation6], 4294966720  ;;  %v370_v0 = vld [vmem:[#allocation5 + $0x18] sm:$0xff]  ;;  %v369_v1 = vld [vmem:[#allocation5 + $0x10] sm:$0xff]  ;;  %vm375_vm0 = vcmask 261120   ;;  %vm417_vm1 = vcmask 1043456  }
  0x31   : > { %391 = vmatpush.msra.mxu0 %v370_v0  ;;  %v368_v2 = vld [vmem:[#allocation5 + $0x8] sm:$0xff]  ;;  %v367_v3 = vld [vmem:[#allocation5] sm:$0xff]  ;;  %v366_v4 = vld [vmem:[%s314_s16] sm:$0xff]  ;;  %s1306_s2 = sld [smem:[#allocation18_spill]]  ;;  %vm414_vm2 = vcmask 31744   ;;  %s1048_s9 = smov 124  }
  0x32   : > { %v409_v5 = vld [vmem:[#allocation7] sm:$0xf]  ;;  %s1049_s14 = smov 108   ;;  %s1202_s17 = sshll.u32 %s1034_s27, 3  ;;  %vm403_vm3 = vcmask 130048  }
  0x33   : > { %392 = vmatpush.msra.mxu0 %v369_v1  ;;  %693 = vmatpush.msk.msra.mxu1 %vm417_vm1, %v409_v5  ;;  %s493_s20 = scalar_lea.hbm %s1292_s6, %s1202_s17  ;;  %s461_s8 = sand.u32 1, %s1121_s30  }
  0x34   : > { %s358_s23 = scalar_lea.vmem [#allocation9], %s1185_s3  ;;  %s497_s16 = sshll.u32 %s493_s20, 4  ;;  %s498_s16 = int_to_ptr.hbm [resolvable:$true] %s497_s16 }
  0x35   : > { %393 = vmatpush.msra.mxu0 %v368_v2  ;;  %s495_s15 = sshll.u32 %s358_s23, 4  ;;  %s508_s11 = scalar_lea.hbm %s1293_s7, %s1202_s17  ;;  %s496_s15 = int_to_ptr.vmem [resolvable:$true] %s495_s15 }
  0x36   : > { %s916_s20 = scalar_lea.hbm %s1292_s6, 16 }
  0x37   : > { %394 = vmatpush.msra.mxu0 %v367_v3  ;;  %v800_v6 = vld [vmem:[%s1306_s2] ss:$0 sm:$0xff] }
  0x38   : > { %692 = vmatmul.msk.f32.vlgmr.msra.gmra.mxu0 %vm375_vm0, %v366_v4 }
  0xb5   : > { %v396_v7 = vpop.f32.mrf.mxu0 }
  0xb6   : > { %v397_v8 = vadd.f32 %v800_v6, %v396_v7 }
  0xb8   : > { %400 = vrot.lane.b32.xlu0 %v397_v8, %s1048_s9  ;;  %694 = vmatmul.msk.f32.vlgmr.msra.gmra.mxu1 %vm414_vm2, %v397_v8  ;;  %s1215_s9 = scalar_lea.sflag [#allocation10], %s461_s8 }
  0xc0   : > { %405 = vrot.lane.b32.xlu0 %v397_v8, %s1049_s14  ;;  %s910_s14 = sshra.s32 %s498_s16, 4  ;;  %s911_s14 = int_to_ptr.hbm [resolvable:$true] %s910_s14 }
  0xc1   : > { %s912_s18 = scalar_lea.hbm %s911_s14, 8  ;;  %p917_p9 = scmp.lt.s32.totalorder %s911_s14, %s1292_s6 }
  0xc2   : > { %p913_p1 = scmp.ne.s32.totalorder %s911_s14, %s912_s18  ;;  %p918_p10 = scmp.lt.s32.totalorder %s916_s20, %s912_s18 }
  0xc4   : > { %p914_p3 = pnand %p913_p1, %p1160_p0  ;;  %p919_p12 = por %p918_p10, %p917_p9 }
  0xc6   : > { %p915_p8 = pneg %p914_p3 }
  0xc8   : > { %p920_p13 = pnand %p919_p12, %p915_p8 }
 0x12a   : > { %v401_v9 = vpop.permute.xlu0 %400 }
 0x12b   : > { %404 = vst.msk [vmem:[%s358_s23] sm:$0xff] %vm403_vm3, %v401_v9 }
 0x12c   : > { %923 = shalt.err (!%p920_p13)
}
 0x12d   : > { %714 = dma.vmem_to_hbm [thread:$0]  (%p1160_p0), %s496_s15, 128, %s498_s16, %s1215_s9   ;;  %v801_v11 = vld [vmem:[%s1290_s4] ss:$0 sm:$0xff] }
 0x12e   : > { %s365_s8 = scalar_lea.vmem [#allocation11], %s1185_s3  ;;  %s512_s1 = sshll.u32 %s508_s11, 4  ;;  %s513_s1 = int_to_ptr.hbm [resolvable:$true] %s512_s1 }
 0x12f   : > { %s510_s23 = sshll.u32 %s365_s8, 4  ;;  %s938_s0 = sshra.s32 %s513_s1, 4  ;;  %s511_s23 = int_to_ptr.vmem [resolvable:$true] %s510_s23  ;;  %s939_s0 = int_to_ptr.hbm [resolvable:$true] %s938_s0 }
 0x130   : > { %s940_s2 = scalar_lea.hbm %s939_s0, 8  ;;  %s944_s11 = scalar_lea.hbm %s1293_s7, 16 }
 0x131   : > { %p941_p2 = scmp.ne.s32.totalorder %s939_s0, %s940_s2  ;;  %p945_p11 = scmp.lt.s32.totalorder %s939_s0, %s1293_s7 }
 0x132   : > { %v406_v10 = vpop.permute.xlu0 %405  ;;  %p946_p1 = scmp.lt.s32.totalorder %s944_s11, %s940_s2 }
 0x133   : > { %408 = vst.msk [vmem:[%s365_s8] sm:$0xff] %vm403_vm3, %v406_v10  ;;  %p942_p4 = pnand %p941_p2, %p1160_p0 }
 0x134   : > { %p947_p3 = por %p946_p1, %p945_p11 }
 0x135   : > { %p943_p7 = pneg %p942_p4 }
 0x137   : > { %p948_p8 = pnand %p947_p3, %p943_p7 }
 0x139   : > { %951 = shalt.err (!%p948_p8)
}
 0x13a   : > { %715 = dma.vmem_to_hbm [thread:$0]  (%p1160_p0), %s511_s23, 128, %s513_s1, %s1215_s9   ;;  %v438_v12 = vpop.f32.mrf.mxu1 }
 0x13b   : > { %v439_v13 = vadd.f32 %v801_v11, %v438_v12  ;;  %s478_s8 = scalar_lea.hbm %s1291_s5, %s1202_s17  ;;  %s351_s27 = scalar_lea.vmem [#allocation8], %s1185_s3 }
 0x13c   : > { %s480_s30 = sshll.u32 %s351_s27, 4  ;;  %s482_s9 = sshll.u32 %s478_s8, 4  ;;  %s481_s30 = int_to_ptr.vmem [resolvable:$true] %s480_s30  ;;  %s483_s9 = int_to_ptr.hbm [resolvable:$true] %s482_s9 }
 0x13d   : > { %v442_v14 = vmin.f32 %v439_v13, 20.0  ;;  %vm441_vm5 = vcmp.gt.f32.partialorder %v439_v13, 20.0  ;;  %s457_s23 = scalar_lea.sflag [#allocation4], %s1182_s22  ;;  %s966_s1 = sshra.s32 %s483_s9, 4  ;;  %s967_s1 = int_to_ptr.hbm [resolvable:$true] %s966_s1 }
 0x13e   : > { %s968_s17 = scalar_lea.hbm %s967_s1, 8  ;;  %s972_s2 = scalar_lea.hbm %s1291_s5, 16 }
 0x13f   : > { %v443_v15 = vmul.f32 1.442695, %v442_v14  ;;  %p969_p9 = scmp.ne.s32.totalorder %s967_s1, %s968_s17  ;;  %p973_p13 = scmp.lt.s32.totalorder %s967_s1, %s1291_s5 }
 0x140   : > { %p974_p2 = scmp.lt.s32.totalorder %s972_s2, %s968_s17 }
 0x141   : > { %802 = vpow2.f32 %v443_v15  ;;  %p970_p10 = pnand %p969_p9, %p1160_p0 }
 0x142   : > { %p975_p4 = por %p974_p2, %p973_p13 }
 0x143   : > { %p971_p12 = pneg %p970_p10 }
 0x145   : > { %p976_p7 = pnand %p975_p4, %p971_p12 }
 0x147   : > { %v803_v16 = vpop.eup %802 }
 0x148   : > { %v445_v17 = vadd.f32 1.0, %v803_v16  ;;  %v448_v18 = vmul.f32 -0.5, %v803_v16  ;;  %v451_v20 = vand.u32 2147483647, %v803_v16 }
 0x14a   : > { %804 = vlog2.f32 %v445_v17  ;;  %v449_v19 = vadd.f32 1.0, %v448_v18  ;;  %vm452_vm4 = vcmp.lt.f32.partialorder %v451_v20, 0.0004427343 }
 0x14c   : > { %v450_v23 = vmul.f32 %v803_v16, %v449_v19 }
 0x150   : > { %v805_v21 = vpop.eup %804 }
 0x151   : > { %v447_v22 = vmul.f32 0.6931472, %v805_v21 }
 0x153   : > { %v453_v24 = vsel %vm452_vm4, %v450_v23, %v447_v22 }
 0x154   : > { %v454_v25 = vsel %vm441_vm5, %v439_v13, %v453_v24 }
 0x155   : > { %455 = vst.msk [vmem:[%s351_s27] sm:$0xff] %vm375_vm0, %v454_v25 }
 0x156   : > { %979 = shalt.err (!%p976_p7)
}
 0x157   : > { %713 = dma.vmem_to_hbm [thread:$0]  (%p1160_p0), %s481_s30, 128, %s483_s9, %s457_s23  }
 0x158 PF: > { %s524_s22 = sand.u32 1, %s1022_s24   ;;  %p731_p11 = pnand %p682_p6, %p1169_p5 }
 0x159   : > { %s525_s11 = scalar_lea.sflag [#allocation4], %s524_s22 }
 0x15a   : > { %p732_p1 = pneg %p731_p11 }
 0x15c   : > { %1013 = dma.done.wait (%p732_p1), %s525_s11, 128  }
 0x15d   : > { %1015 = vsyncadd (%p732_p1), %s525_s11, 4294967168  ;;  %s1307_s14 = sadd.s32 4294967294, %s1042_s29  }
 0x15e   : > { %s534_s18 = sand.u32 1, %s1307_s14  }
 0x15f   : > { %s535_s19 = scalar_lea.sflag [#allocation10], %s534_s18 }
 0x160   : > { %1017 = dma.done.wait (%p732_p1), %s535_s19, 256  }
 0x161   : > { %1019 = vsyncadd (%p732_p1), %s535_s19, 4294967040  ;;  %s28_s29 = sadd.s32 1, %s1042_s29   ;;  %s1308_s24 = smov %s1026_s25 }
 0x162   : > { %p25_p0 = scmp.ge.s32.totalorder %s28_s29, 4   ;;  %s1309_s25 = smov %s1030_s26 }
 0x163   : > { %s1310_s26 = smov %s1167_s12  ;;  %s1311_s27 = smov %s1038_s28 }
 0x164   : > { %s1312_s28 = smov %s1314_s21  ;;  %27 = sbr.rel (!%p25_p0) target bundleno = 14 (0xe), region = 125 }
 0x169   :  { %551 = vsyncpa [#allocation3], 1 }
 0x16a   :  { %553 = vsyncpa [#allocation3 + $0x1], 1 }
 0x16b   :  { %554 = vsyncpa [#allocation6], 1 }
 0x16c   :  { %555 = vsyncpa [#allocation4], 1 }
 0x16d   :  { %557 = vsyncpa [#allocation4 + $0x1], 1 }
 0x16e   :  { %558 = vsyncpa [#allocation10], 1 }
 0x16f   :  { %560 = vsyncpa [#allocation10 + $0x1], 1 }

</bundles_post_ra>
